<compile_context>
chip_gen: v7x
topology: tpu7x:2x2x1
jax: 0.10.0
libtpu: 0.0.40
codegen_flags: <defaults>
</compile_context>

<pallas_src>
import functools

import jax
import jax.numpy as jnp
from jax.experimental import pallas as pl
from jax.experimental.pallas import tpu as pltpu


# ---------------------------------------------------------------------------
# Kernels
# ---------------------------------------------------------------------------

def _mean_kernel_single(x_ref, o_ref, *, inv_r):
    """Whole reduction extent resident in the block: one-shot sublane mean."""
    acc = jnp.sum(x_ref[...].astype(jnp.float32), axis=1)   # sublane reduce
    o_ref[...] = (acc * inv_r).astype(o_ref.dtype)


def _mean_kernel_acc(x_ref, o_ref, acc_ref, *, inv_r):
    """Reduction extent tiled over the last ("arbitrary") grid axis."""
    k = pl.program_id(2)

    @pl.when(k == 0)
    def _():
        acc_ref[...] = jnp.zeros_like(acc_ref)

    acc_ref[...] += jnp.sum(x_ref[...].astype(jnp.float32), axis=1)

    @pl.when(k == pl.num_programs(2) - 1)
    def _():
        o_ref[...] = (acc_ref[...] * inv_r).astype(o_ref.dtype)


# ---------------------------------------------------------------------------
# Tiling / VMEM planning
# ---------------------------------------------------------------------------

def _device_kind():
    try:
        return jax.devices()[0].device_kind.lower()
    except Exception:  # pragma: no cover
        return ""


def _vmem_plan(kind):
    """(per-block VMEM budget bytes, vmem_limit_bytes or None) per generation."""
    mib = 1 << 20
    if "v7" in kind:                                  # 64 MiB physical VMEM
        return 36 * mib, 44 * mib
    if "v6" in kind or "v5p" in kind or "v4" in kind:  # 128 MiB physical
        return 64 * mib, 100 * mib
    if "v5" in kind:                                  # v5e: 128 MiB physical
        return 48 * mib, 64 * mib
    return 12 * mib, None   # unknown chip: stay under the default scoped limit


def _divisors_desc(n):
    ds = set()
    i = 1
    while i * i <= n:
        if n % i == 0:
            ds.add(i)
            ds.add(n // i)
        i += 1
    return sorted(ds, reverse=True)


def _pick_tiles(pre, r, post, itemsize, budget):
    """Largest (pre_t, r_t, lane_t) whose pipelined footprint fits `budget`.

    Shrink order: r first (reduction axis, accumulator keeps it cheap), then
    pre, then the lane tile last (lane-dense output is the dominant lever).
    """
    sub = {4: 8, 2: 16, 1: 32}.get(itemsize, 8)

    lane_cands = [d for d in _divisors_desc(post) if d % 128 == 0]
    if not lane_cands:
        # TODO(synk): pad `post` to a multiple of 128 if masked vst on the
        # (much smaller) output ever shows up as the bottleneck.
        lane_cands = [post]
    pre_cands = [d for d in _divisors_desc(pre) if d % sub == 0 or d == pre]
    r_cands = [d for d in _divisors_desc(r) if d % sub == 0 or d == r]

    def fits(pt, rt, lt):
        blk = (2 * pt * rt * lt + 2 * pt * lt) * itemsize  # dbl-buffered in/out
        blk += 4 * pt * lt                                 # f32 scratch accumulator
        if itemsize < 4:
            blk += 4 * pt * rt * lt                        # f32 upcast temporary
        return blk <= budget

    for lt in lane_cands:                 # keep the lane tile as big as possible
        for pt in pre_cands:              # then pre
            rt = next((d for d in r_cands if fits(pt, d, lt)), None)
            if rt is not None:
                return pt, rt, lt
    # Nothing fits the budget: smallest blocks (still correct; vmem_limit_bytes
    # gives the compiler headroom).
    return pre_cands[-1], r_cands[-1], lane_cands[-1]


def _ensure_v7x_parallelism(kind, pre, post, pre_t, lane_t, itemsize, total_bytes):
    """On v7x (2 TCs) make sure there are >= 2 parallel grid blocks when the
    problem is big enough to amortize the per-step overhead."""
    if "v7" not in kind or total_bytes < (2 << 20):
        return pre_t, lane_t
    if (pre // pre_t) * (post // lane_t) >= 2:
        return pre_t, lane_t
    sub = {4: 8, 2: 16, 1: 32}.get(itemsize, 8)
    if lane_t % 256 == 0:
        return pre_t, lane_t // 2
    if pre_t % (2 * sub) == 0:
        return pre_t // 2, lane_t
    return pre_t, lane_t


# ---------------------------------------------------------------------------
# Wrapper (== Average(axis).forward)
# ---------------------------------------------------------------------------

def average(x, axis):
    """Pallas equivalent of Average(axis).forward(x)."""
    ndim = x.ndim
    if ndim == 0:
        raise ValueError("Average expects at least a 1-D input.")
    ax = axis % ndim
    shape = x.shape

    pre = 1
    for d in shape[:ax]:
        pre *= d
    r = shape[ax]
    post = 1
    for d in shape[ax + 1:]:
        post *= d

    x3 = x.reshape(pre, r, post)          # row-major reshape: no data movement
    itemsize = x.dtype.itemsize

    kind = _device_kind()
    budget, vmem_limit = _vmem_plan(kind)
    pre_t, r_t, lane_t = _pick_tiles(pre, r, post, itemsize, budget)
    pre_t, lane_t = _ensure_v7x_parallelism(
        kind, pre, post, pre_t, lane_t, itemsize, x3.size * itemsize)

    n_pre = pre // pre_t
    n_lane = post // lane_t
    n_r = r // r_t
    inv_r = 1.0 / float(r)

    cost = pl.CostEstimate(
        flops=pre * r * post,             # ~1 add per input element (mem-bound)
        transcendentals=0,
        bytes_accessed=x3.size * itemsize + pre * post * itemsize,
    )

    if n_r == 1:
        # Whole reduction extent per block: no scratch, 2-D parallel grid.
        grid = (n_pre, n_lane)
        in_specs = [pl.BlockSpec((pre_t, r, lane_t), lambda i, j: (i, 0, j))]
        out_specs = pl.BlockSpec((pre_t, lane_t), lambda i, j: (i, j))
        scratch_shapes = ()
        kernel = functools.partial(_mean_kernel_single, inv_r=inv_r)
        sems = ("parallel", "parallel")
    else:
        # Reduction axis last ("arbitrary") with an f32 accumulator scratch.
        grid = (n_pre, n_lane, n_r)
        in_specs = [pl.BlockSpec((pre_t, r_t, lane_t), lambda i, j, k: (i, k, j))]
        out_specs = pl.BlockSpec((pre_t, lane_t), lambda i, j, k: (i, j))
        scratch_shapes = [pltpu.VMEM((pre_t, lane_t), jnp.float32)]
        kernel = functools.partial(_mean_kernel_acc, inv_r=inv_r)
        sems = ("parallel", "parallel", "arbitrary")

    cp_kwargs = dict(dimension_semantics=sems)
    if vmem_limit is not None:
        cp_kwargs["vmem_limit_bytes"] = vmem_limit

    out2d = pl.pallas_call(
        kernel,
        out_shape=jax.ShapeDtypeStruct((pre, post), x.dtype),
        grid_spec=pltpu.PrefetchScalarGridSpec(
            num_scalar_prefetch=0,
            grid=grid,
            in_specs=in_specs,
            out_specs=out_specs,
            scratch_shapes=scratch_shapes,
        ),
        compiler_params=pltpu.CompilerParams(**cp_kwargs),
        cost_estimate=cost,
    )(x3)

    out = out2d.reshape(shape[:ax] + shape[ax + 1:])   # == x.mean(dim=ax)

    # torch.squeeze(output, axis): `axis` is interpreted against the *reduced*
    # tensor — out-of-range dims raise (as in PyTorch), size-1 dims are dropped.
    nd = out.ndim
    lo, hi = (-1, 0) if nd == 0 else (-nd, nd - 1)
    if not (lo <= axis <= hi):
        raise IndexError(
            f"squeeze(): dim {axis} out of range for tensor with {nd} dims")
    if nd > 0:
        sq = axis % nd
        if out.shape[sq] == 1:
            out = jnp.squeeze(out, axis=sq)
    return out


if __name__ == "__main__":
    key = jax.random.PRNGKey(0)
    AXIS = 1
    x = jax.random.normal(key, (2, 4, 16, 16), jnp.float32)

    fwd = jax.jit(functools.partial(average, axis=AXIS))
    out = jax.block_until_ready(fwd(x))

    ref = jnp.mean(x, axis=AXIS)          # squeeze is a no-op here (dim 1 is 16)
    assert out.shape == ref.shape, (out.shape, ref.shape)
    assert jnp.allclose(out, ref, atol=1e-5, rtol=1e-5), float(
        jnp.max(jnp.abs(out - ref)))
    print("KERNEL_OK")
</pallas_src>

<mosaic_0001>
module attributes {stable_mosaic.version = 11 : i64} {
  func.func @_mean_kernel_single(%arg0: i32, %arg1: i32, %arg2: memref<2x4x256xf32, #tpu.memory_space<vmem>>, %arg3: memref<2x256xf32, #tpu.memory_space<vmem>>) attributes {dimension_semantics = [#tpu.dimension_semantics<parallel>, #tpu.dimension_semantics<parallel>], iteration_bounds = array<i64: 1, 1>, scalar_prefetch = 0 : i64, scratch_operands = 0 : i64, tpu.core_type = #tpu.core_type<tc>, window_params = [{transform_indices = @transform_0, window_bounds = array<i64: 2, 4, 256>}, {transform_indices = @transform_1, window_bounds = array<i64: 2, 256>}]} {
    %c0 = arith.constant 0 : index
    %c0_0 = arith.constant 0 : index
    %c0_1 = arith.constant 0 : index
    %0 = vector.load %arg2[%c0, %c0_0, %c0_1] : memref<2x4x256xf32, #tpu.memory_space<vmem>>, vector<2x4x256xf32>
    %cst = arith.constant dense<0.000000e+00> : vector<2x256xf32>
    %1 = vector.multi_reduction <add>, %0, %cst [1] : vector<2x4x256xf32> to vector<2x256xf32>
    %cst_2 = arith.constant 2.500000e-01 : f32
    %2 = vector.broadcast %cst_2 : f32 to vector<2x256xf32>
    %3 = arith.mulf %1, %2 : vector<2x256xf32>
    %c0_3 = arith.constant 0 : index
    %c0_4 = arith.constant 0 : index
    %4 = vector.load %arg3[%c0_3, %c0_4] : memref<2x256xf32, #tpu.memory_space<vmem>>, vector<2x256xf32>
    tpu.vector_store %arg3[%c0_3, %c0_4], %3 {strides = array<i32>} : memref<2x256xf32, #tpu.memory_space<vmem>>, vector<2x256xf32>,
    return
  }
  func.func @transform_0(%arg0: i32, %arg1: i32) -> (i32, i32, i32) {
    %c0_i32 = arith.constant 0 : i32
    %c0_i32_0 = arith.constant 0 : i32
    return %arg0, %c0_i32, %arg1 : i32, i32, i32
  }
  func.func @transform_1(%arg0: i32, %arg1: i32) -> (i32, i32) {
    %c0_i32 = arith.constant 0 : i32
    return %arg0, %arg1 : i32, i32
  }
}

</mosaic_0001>

<bundles_post_ra>
// kernel: average.1
= control target key start
LH: loop header
LB: loop body
LE: loop exit
PB: predicated region body
PF: predicated region fallthrough
CT: control target
= control target key end

     0   :  { %vm16_vm0 = vcmask 1043456   ;;  %v91_v18 = vmov 1983009808   ;;  %v57_v20 = vlaneseq  ;;  %vm74_vm1 = vcmask 1041409   ;;  %s111_s0 = inlined_call_operand.vmem [shape: f32[2,4,256], index: 0, kind: input, shape index: {}]   ;;  %s112_s1 = inlined_call_operand.vmem [shape: f32[2,256], index: 1, kind: output, shape index: {}]  }
   0x1   :  { %v8_v0 = vld [vmem:[%s111_s0] sm:$0xff]  ;;  %v9_v1 = vld [vmem:[%s111_s0 + $0x8] sm:$0xff]  ;;  %v55_v19 = vunpack.c.l.s4 %v91_v18  ;;  %vm76_vm2 = vcmask 1043459   ;;  %vm78_vm3 = vcmask 1045509   ;;  %vm80_vm4 = vcmask 1047559  }
   0x2   :  { %v12_v2 = vcombine.high %v8_v0, %v8_v0  ;;  %v13_v3 = vcombine.high %v9_v1, %v9_v1  ;;  %v17_v4 = vsel %vm16_vm0, %v8_v0, 0.0  ;;  %v31_v5 = vsel %vm16_vm0, %v9_v1, 0.0 }
   0x3   :  { %v18_v6 = vrot.slane %v17_v4, 4  ;;  %v32_v7 = vrot.slane %v31_v5, 4  ;;  %v56_v29 = vunpack.c.0.s8 %v55_v19  ;;  %v58_v30 = vshrl.u32 %v57_v20, 7 }
   0x4   :  { %v24_v8 = vsel %vm16_vm0, %v12_v2, 0.0  ;;  %v38_v9 = vsel %vm16_vm0, %v13_v3, 0.0 }
   0x5   :  { %v19_v10 = vadd.f32 %v18_v6, %v17_v4  ;;  %v25_v11 = vrot.slane %v24_v8, 4  ;;  %v33_v12 = vadd.f32 %v32_v7, %v31_v5  ;;  %v39_v13 = vrot.slane %v38_v9, 4 }
   0x6   :  { %v59_v41 = vsub.s32 %v56_v29, %v58_v30 }
   0x7   :  { %v20_v14 = vrot.slane %v19_v10, 2  ;;  %v26_v15 = vadd.f32 %v25_v11, %v24_v8  ;;  %v34_v16 = vrot.slane %v33_v12, 2  ;;  %v40_v17 = vadd.f32 %v39_v13, %v38_v9 }
   0x9   :  { %v21_v21 = vadd.f32 %v20_v14, %v19_v10  ;;  %v27_v22 = vrot.slane %v26_v15, 2  ;;  %v35_v23 = vadd.f32 %v34_v16, %v33_v12  ;;  %v41_v24 = vrot.slane %v40_v17, 2 }
   0xb   :  { %v22_v25 = vrot.slane %v21_v21, 1  ;;  %v28_v26 = vadd.f32 %v27_v22, %v26_v15  ;;  %v36_v27 = vrot.slane %v35_v23, 1  ;;  %v42_v28 = vadd.f32 %v41_v24, %v40_v17 }
   0xd   :  { %v23_v31 = vadd.f32 %v22_v25, %v21_v21  ;;  %v29_v32 = vrot.slane %v28_v26, 1  ;;  %v37_v33 = vadd.f32 %v36_v27, %v35_v23  ;;  %v43_v34 = vrot.slane %v42_v28, 1 }
   0xf   :  { %v30_v35 = vadd.f32 %v29_v32, %v28_v26  ;;  %v44_v36 = vadd.f32 %v43_v34, %v42_v28  ;;  %v45_v37 = vmul.f32 0.25, %v23_v31  ;;  %v47_v38 = vmul.f32 0.25, %v37_v33 }
  0x11   :  { %v46_v39 = vmul.f32 0.25, %v30_v35  ;;  %v48_v40 = vmul.f32 0.25, %v44_v36 }
  0x13   :  { %v53_v42 = vcombine.low %v45_v37, %v46_v39  ;;  %v61_v43 = vcombine.low %v47_v38, %v48_v40 }
  0x15   :  { %v60_v44 = vrot.slane %v53_v42, %v59_v41  ;;  %v68_v45 = vrot.slane %v61_v43, %v59_v41 }
  0x17   :  { %v73_v46 = vrot.slane %v68_v45, 7 }
  0x19   :  { %v75_v47 = vsel %vm74_vm1, %v73_v46, %v60_v44 }
  0x1a   :  { %v77_v48 = vsel %vm76_vm2, %v73_v46, %v75_v47 }
  0x1b   :  { %v79_v49 = vsel %vm78_vm3, %v73_v46, %v77_v48 }
  0x1c   :  { %v81_v50 = vsel %vm80_vm4, %v73_v46, %v79_v49 }
  0x1d   :  { %83 = vst [vmem:[%s112_s1] sm:$0xf] %v81_v50 }

</bundles_post_ra>
